<compile_context>
chip_gen: v7x
topology: tpu7x:2x2x1
jax: 0.10.0
libtpu: 0.0.40
codegen_flags: <defaults>
</compile_context>

<pallas_src>
import functools

import jax
import jax.numpy as jnp
from jax import lax
from jax.experimental import pallas as pl
from jax.experimental.pallas import tpu as pltpu


def _make_yolo_kernel(num_classes: int, S: int, B: int, stride: int):
    C = num_classes
    W = H = S
    HW = H * W
    fstride = float(stride)
    half_w_scale = 0.5 * W * fstride     # sigmoid(w) * W * stride / 2
    half_h_scale = 0.5 * H * fstride

    def kernel(x_ref, o_ref):
        # x_ref: (n_ch, HW)        channels on sublanes, cells on lanes
        # o_ref: (B*(5+C), HW)     output fields on sublanes, cells on lanes
        f32 = jnp.float32

        # ---- class probabilities: softmax over the class channels (sublane
        # axis reduction).  Done first so logits/ex die before the box loop.
        logits = x_ref[5 * B:, :].astype(f32)                  # (C, HW)
        mx = jnp.max(logits, axis=0, keepdims=True)
        ex = jnp.exp(logits - mx)
        denom = jnp.sum(ex, axis=0, keepdims=True)
        inv = pl.reciprocal(denom, approx=True)                # EUP vrcp
        inv = inv * (2.0 - denom * inv)                        # Newton step -> ~f32 exact
        probs = ex * inv                                       # (C, HW)

        # ---- sigmoid over the box + confidence channels (EUP).
        sig = jax.nn.sigmoid(x_ref[: 5 * B, :].astype(f32))    # (5B, HW)

        # ---- per-lane grid-cell (x, y) shifts.  Lane l is cell h*W + w of
        # this image; values are < HW = 49, so the f32 floor math is exact.
        cell = lax.broadcasted_iota(jnp.int32, (1, HW), 1).astype(f32)
        ys = jnp.floor((cell + 0.5) * (1.0 / W))               # h index
        xs = cell - ys * W                                     # w index

        # ---- assemble the whole (B*(5+C), HW) block, one store (no narrow
        # masked per-field stores -- the vst slot is the scarce resource).
        rows = []
        for b in range(B):
            cx = (sig[4 * b + 0: 4 * b + 1, :] + xs) * fstride
            cy = (sig[4 * b + 1: 4 * b + 2, :] + ys) * fstride
            half_w = sig[4 * b + 2: 4 * b + 3, :] * half_w_scale
            half_h = sig[4 * b + 3: 4 * b + 4, :] * half_h_scale
            conf = sig[4 * B + b: 4 * B + b + 1, :]
            rows += [cx - half_w, cy - half_h, cx + half_w, cy + half_h,
                     conf, probs]
        out_block = jnp.concatenate(rows, axis=0)              # (B*(5+C), HW)
        o_ref[...] = out_block.astype(o_ref.dtype)             # single store

    return kernel


@functools.partial(jax.jit, static_argnames=("num_classes", "S", "B", "stride"))
def yolo_layer(outputs, num_classes=20, S=7, B=2, stride=64):
    """YOLOv1 head: (N, 5B+C, S, S) -> (N, S*S*B, 5+C) [x1,y1,x2,y2,conf,probs]."""
    N, n_ch, H, W = outputs.shape
    assert n_ch == 5 * B + num_classes
    assert H == W == S, f"H={H} W={W} S={S}"
    HW = H * W
    out_rows = B * (5 + num_classes)

    x = outputs.reshape(N, n_ch, HW)                 # free reshape, no copy
    kernel = _make_yolo_kernel(num_classes, S, B, stride)

    out = pl.pallas_call(
        kernel,
        out_shape=jax.ShapeDtypeStruct((N, out_rows, HW), outputs.dtype),
        grid=(N,),
        in_specs=[pl.BlockSpec((None, n_ch, HW), lambda n: (n, 0, 0))],
        out_specs=pl.BlockSpec((None, out_rows, HW), lambda n: (n, 0, 0)),
        compiler_params=pltpu.CompilerParams(dimension_semantics=("parallel",)),
    )(x)

    # (N, B*(5+C), HW) -> (N, HW, B*(5+C)) -> (N, HW*B, 5+C).  The reshape is
    # free; only this one small transpose remains (see TODO in the header).
    return jnp.transpose(out, (0, 2, 1)).reshape(N, HW * B, 5 + num_classes)


def yolo_layer_ref(outputs, num_classes=20, S=7, B=2, stride=64):
    """Pure-JAX reference mirroring the PyTorch forward, for verification."""
    N, n_ch, H, W = outputs.shape
    dtype = outputs.dtype
    o = jnp.transpose(outputs, (0, 2, 3, 1))
    sig = jax.nn.sigmoid(o[..., : 5 * B])
    boxes = sig[..., : 4 * B].reshape(N, H, W, B, 4)
    confs = sig[..., 4 * B: 5 * B]
    probs = jax.nn.softmax(o[..., 5 * B:], axis=-1)
    xs = jnp.broadcast_to(jnp.arange(W, dtype=dtype).reshape(1, 1, W, 1), (N, H, W, B))
    ys = jnp.broadcast_to(jnp.arange(H, dtype=dtype).reshape(1, H, 1, 1), (N, H, W, B))
    cx = (boxes[..., 0] + xs) * stride
    cy = (boxes[..., 1] + ys) * stride
    bw = boxes[..., 2] * W * stride
    bh = boxes[..., 3] * H * stride
    box_xyxy = jnp.stack([cx - bw / 2, cy - bh / 2, cx + bw / 2, cy + bh / 2], axis=-1)
    probs_b = jnp.broadcast_to(probs[:, :, :, None, :], (N, H, W, B, num_classes))
    preds = jnp.concatenate([box_xyxy, confs[..., None], probs_b], axis=-1)
    return preds.reshape(N, H * W * B, 5 + num_classes)


if __name__ == "__main__":
    num_classes, S, B, stride = 20, 7, 2, 64
    N = 2
    n_ch = 5 * B + num_classes  # 30

    key = jax.random.PRNGKey(0)
    x = jax.random.normal(key, (N, n_ch, S, S), dtype=jnp.float32)

    out = yolo_layer(x, num_classes=num_classes, S=S, B=B, stride=stride)
    out = jax.block_until_ready(out)

    ref = yolo_layer_ref(x, num_classes=num_classes, S=S, B=B, stride=stride)
    assert out.shape == (N, S * S * B, 5 + num_classes), out.shape
    assert jnp.allclose(out, ref, atol=1e-4, rtol=1e-4), float(
        jnp.max(jnp.abs(out - ref)))

    print("KERNEL_OK")
</pallas_src>

<mosaic_0001>
module attributes {stable_mosaic.version = 11 : i64} {
  func.func @kernel(%arg0: i32, %arg1: memref<1x30x49xf32, #tpu.memory_space<vmem>>, %arg2: memref<1x50x49xf32, #tpu.memory_space<vmem>>) attributes {dimension_semantics = [#tpu.dimension_semantics<parallel>], iteration_bounds = array<i64: 2>, scalar_prefetch = 0 : i64, scratch_operands = 0 : i64, tpu.core_type = #tpu.core_type<tc>, window_params = [{transform_indices = @transform_0, window_bounds = array<i64: 1, 30, 49>}, {transform_indices = @transform_1, window_bounds = array<i64: 1, 50, 49>}]} {
    %c0 = arith.constant 0 : index
    %c10 = arith.constant 10 : index
    %c0_0 = arith.constant 0 : index
    %0 = vector.load %arg1[%c0, %c10, %c0_0] : memref<1x30x49xf32, #tpu.memory_space<vmem>>, vector<1x20x49xf32>
    %1 = vector.shape_cast %0 : vector<1x20x49xf32> to vector<20x49xf32>
    %cst = arith.constant dense<0xFF800000> : vector<49xf32>
    %2 = vector.multi_reduction <maximumf>, %1, %cst [0] : vector<20x49xf32> to vector<49xf32>
    %3 = vector.shape_cast %2 : vector<49xf32> to vector<1x49xf32>
    %4 = vector.broadcast %3 : vector<1x49xf32> to vector<20x49xf32>
    %5 = arith.subf %1, %4 : vector<20x49xf32>
    %6 = math.exp %5 : vector<20x49xf32>
    %cst_1 = arith.constant dense<0.000000e+00> : vector<49xf32>
    %7 = vector.multi_reduction <add>, %6, %cst_1 [0] : vector<20x49xf32> to vector<49xf32>
    %8 = vector.shape_cast %7 : vector<49xf32> to vector<1x49xf32>
    %9 = tpu.reciprocal %8 {approx = true} : vector<1x49xf32> -> vector<1x49xf32>
    %10 = arith.mulf %8, %9 : vector<1x49xf32>
    %cst_2 = arith.constant 2.000000e+00 : f32
    %11 = vector.broadcast %cst_2 : f32 to vector<1x49xf32>
    %12 = arith.subf %11, %10 : vector<1x49xf32>
    %13 = arith.mulf %9, %12 : vector<1x49xf32>
    %14 = vector.broadcast %13 : vector<1x49xf32> to vector<20x49xf32>
    %15 = arith.mulf %6, %14 : vector<20x49xf32>
    %c0_3 = arith.constant 0 : index
    %c0_4 = arith.constant 0 : index
    %c0_5 = arith.constant 0 : index
    %16 = vector.load %arg1[%c0_3, %c0_4, %c0_5] : memref<1x30x49xf32, #tpu.memory_space<vmem>>, vector<1x10x49xf32>
    %17 = vector.shape_cast %16 : vector<1x10x49xf32> to vector<10x49xf32>
    %18 = arith.negf %17 : vector<10x49xf32>
    %19 = math.exp %18 : vector<10x49xf32>
    %cst_6 = arith.constant 1.000000e+00 : f32
    %20 = vector.broadcast %cst_6 : f32 to vector<10x49xf32>
    %21 = arith.addf %20, %19 : vector<10x49xf32>
    %22 = arith.divf %20, %21 : vector<10x49xf32>
    %23 = tpu.iota {dimensions = array<i32: 1>} : vector<1x49xi32>
    %24 = arith.sitofp %23 : vector<1x49xi32> to vector<1x49xf32>
    %cst_7 = arith.constant 5.000000e-01 : f32
    %25 = vector.broadcast %cst_7 : f32 to vector<1x49xf32>
    %26 = arith.addf %24, %25 : vector<1x49xf32>
    %cst_8 = arith.constant 0.142857149 : f32
    %27 = vector.broadcast %cst_8 : f32 to vector<1x49xf32>
    %28 = arith.mulf %26, %27 : vector<1x49xf32>
    %29 = math.floor %28 : vector<1x49xf32>
    %cst_9 = arith.constant 7.000000e+00 : f32
    %30 = vector.broadcast %cst_9 : f32 to vector<1x49xf32>
    %31 = arith.mulf %29, %30 : vector<1x49xf32>
    %32 = arith.subf %24, %31 : vector<1x49xf32>
    %33 = vector.extract_strided_slice %22 {offsets = [0, 0], sizes = [1, 49], strides = [1, 1]} : vector<10x49xf32> to vector<1x49xf32>
    %34 = arith.addf %33, %32 : vector<1x49xf32>
    %cst_10 = arith.constant 6.400000e+01 : f32
    %35 = vector.broadcast %cst_10 : f32 to vector<1x49xf32>
    %36 = arith.mulf %34, %35 : vector<1x49xf32>
    %37 = vector.extract_strided_slice %22 {offsets = [1, 0], sizes = [1, 49], strides = [1, 1]} : vector<10x49xf32> to vector<1x49xf32>
    %38 = arith.addf %37, %29 : vector<1x49xf32>
    %cst_11 = arith.constant 6.400000e+01 : f32
    %39 = vector.broadcast %cst_11 : f32 to vector<1x49xf32>
    %40 = arith.mulf %38, %39 : vector<1x49xf32>
    %41 = vector.extract_strided_slice %22 {offsets = [2, 0], sizes = [1, 49], strides = [1, 1]} : vector<10x49xf32> to vector<1x49xf32>
    %cst_12 = arith.constant 2.240000e+02 : f32
    %42 = vector.broadcast %cst_12 : f32 to vector<1x49xf32>
    %43 = arith.mulf %41, %42 : vector<1x49xf32>
    %44 = vector.extract_strided_slice %22 {offsets = [3, 0], sizes = [1, 49], strides = [1, 1]} : vector<10x49xf32> to vector<1x49xf32>
    %cst_13 = arith.constant 2.240000e+02 : f32
    %45 = vector.broadcast %cst_13 : f32 to vector<1x49xf32>
    %46 = arith.mulf %44, %45 : vector<1x49xf32>
    %47 = vector.extract_strided_slice %22 {offsets = [8, 0], sizes = [1, 49], strides = [1, 1]} : vector<10x49xf32> to vector<1x49xf32>
    %48 = arith.subf %36, %43 : vector<1x49xf32>
    %49 = arith.subf %40, %46 : vector<1x49xf32>
    %50 = arith.addf %36, %43 : vector<1x49xf32>
    %51 = arith.addf %40, %46 : vector<1x49xf32>
    %52 = vector.extract_strided_slice %22 {offsets = [4, 0], sizes = [1, 49], strides = [1, 1]} : vector<10x49xf32> to vector<1x49xf32>
    %53 = arith.addf %52, %32 : vector<1x49xf32>
    %cst_14 = arith.constant 6.400000e+01 : f32
    %54 = vector.broadcast %cst_14 : f32 to vector<1x49xf32>
    %55 = arith.mulf %53, %54 : vector<1x49xf32>
    %56 = vector.extract_strided_slice %22 {offsets = [5, 0], sizes = [1, 49], strides = [1, 1]} : vector<10x49xf32> to vector<1x49xf32>
    %57 = arith.addf %56, %29 : vector<1x49xf32>
    %cst_15 = arith.constant 6.400000e+01 : f32
    %58 = vector.broadcast %cst_15 : f32 to vector<1x49xf32>
    %59 = arith.mulf %57, %58 : vector<1x49xf32>
    %60 = vector.extract_strided_slice %22 {offsets = [6, 0], sizes = [1, 49], strides = [1, 1]} : vector<10x49xf32> to vector<1x49xf32>
    %cst_16 = arith.constant 2.240000e+02 : f32
    %61 = vector.broadcast %cst_16 : f32 to vector<1x49xf32>
    %62 = arith.mulf %60, %61 : vector<1x49xf32>
    %63 = vector.extract_strided_slice %22 {offsets = [7, 0], sizes = [1, 49], strides = [1, 1]} : vector<10x49xf32> to vector<1x49xf32>
    %cst_17 = arith.constant 2.240000e+02 : f32
    %64 = vector.broadcast %cst_17 : f32 to vector<1x49xf32>
    %65 = arith.mulf %63, %64 : vector<1x49xf32>
    %66 = vector.extract_strided_slice %22 {offsets = [9, 0], sizes = [1, 49], strides = [1, 1]} : vector<10x49xf32> to vector<1x49xf32>
    %67 = arith.subf %55, %62 : vector<1x49xf32>
    %68 = arith.subf %59, %65 : vector<1x49xf32>
    %69 = arith.addf %55, %62 : vector<1x49xf32>
    %70 = arith.addf %59, %65 : vector<1x49xf32>
    %71 = tpu.concatenate %48, %49, %50, %51, %47, %15, %67, %68, %69, %70, %66, %15 in 0 : vector<1x49xf32>, vector<1x49xf32>, vector<1x49xf32>, vector<1x49xf32>, vector<1x49xf32>, vector<20x49xf32>, vector<1x49xf32>, vector<1x49xf32>, vector<1x49xf32>, vector<1x49xf32>, vector<1x49xf32>, vector<20x49xf32> -> vector<50x49xf32>
    %c0_18 = arith.constant 0 : index
    %c0_19 = arith.constant 0 : index
    %c0_20 = arith.constant 0 : index
    %72 = vector.load %arg2[%c0_18, %c0_19, %c0_20] : memref<1x50x49xf32, #tpu.memory_space<vmem>>, vector<1x50x49xf32>
    %73 = vector.shape_cast %72 : vector<1x50x49xf32> to vector<50x49xf32>
    %74 = vector.shape_cast %71 : vector<50x49xf32> to vector<1x50x49xf32>
    tpu.vector_store %arg2[%c0_18, %c0_19, %c0_20], %74 {strides = array<i32>} : memref<1x50x49xf32, #tpu.memory_space<vmem>>, vector<1x50x49xf32>,
    return
  }
  func.func @transform_0(%arg0: i32) -> (i32, i32, i32) {
    %c0_i32 = arith.constant 0 : i32
    %c0_i32_0 = arith.constant 0 : i32
    %c0_i32_1 = arith.constant 0 : i32
    return %arg0, %c0_i32, %c0_i32_0 : i32, i32, i32
  }
  func.func @transform_1(%arg0: i32) -> (i32, i32, i32) {
    %c0_i32 = arith.constant 0 : i32
    %c0_i32_0 = arith.constant 0 : i32
    %c0_i32_1 = arith.constant 0 : i32
    return %arg0, %c0_i32, %c0_i32_0 : i32, i32, i32
  }
}

</mosaic_0001>

<bundles_post_ra>
// kernel: yolo_layer.1
= control target key start
LH: loop header
LB: loop body
LE: loop exit
PB: predicated region body
PF: predicated region fallthrough
CT: control target
= control target key end

     0   :  { %s370_s6 = smov 0   ;;  %s419_s0 = inlined_call_operand.vmem [shape: f32[2,30,49], index: 0, kind: input, shape index: {}]   ;;  %s420_s1 = inlined_call_operand.vmem [shape: f32[2,50,49], index: 1, kind: output, shape index: {}]  }
   0x1 LB: > { %s314_s7 = sadd.s32 4294967295, %s358_s6   ;;  %p318_p0 = scmp.ge.s32.totalorder %s358_s6, 1  ;;  %s358_s6 = sphi %s370_s6, %s11_s6  }
   0x2   : > { %p87_p1 = scmp.lt.s32.totalorder %s358_s6, 3 }
   0x4   : > { %p88_p2 = pnand %p318_p0, %p87_p1 }
   0x5   : > { %p107_p3 = scmp.lt.s32.totalorder (!%p88_p2), %s314_s7, 1  ;;  %vm120_vm0 = vcmask (!%p88_p2), 400384   ;;  %vm123_vm1 = vcmask (!%p88_p2), 396288   ;;  %v174_v16 = vlaneseq (!%p88_p2)  ;;  %vm236_vm2 = vcmask (!%p88_p2), 1040384  }
   0x6   : > { %91 = sbr.rel (%p88_p2) target bundleno = 95 (0x5f), region = 24  ;;  %vm238_vm3 = vcmask (!%p88_p2), 1041408   ;;  %vm240_vm4 = vcmask (!%p88_p2), 1042432   ;;  %vm242_vm5 = vcmask (!%p88_p2), 1043456   ;;  %vm206_vm6 = vcmask (!%p88_p2), 1044480  }
   0x7   : > { %v175_v23 = vand.u32 (!%p88_p2), 127, %v174_v16  ;;  %vm226_vm7 = vcmask (!%p88_p2), 1045504   ;;  %vm257_vm8 = vcmask (!%p88_p2), 394240  }
   0x9   : > { %v176_v24 = vcvt.s32.f32 (!%p88_p2), %v175_v23 }
   0xb   : > { %v177_v27 = vadd.f32 (!%p88_p2), 0.5, %v176_v24 }
   0xd   : > { %s422_s7 = smov (!%p107_p3, %s314_s7), 1  ;;  %v178_v33 = vmul.f32 0.14285715, %v177_v27 }
   0xe   : > { %s326_s8 = sshll.u32 %s422_s7, 5  ;;  %s327_s12 = smul.u32 56, %s422_s7 }
   0xf   : > { %s111_s11 = scalar_lea.vmem %s419_s0, %s326_s8  ;;  %v179_v39 = vfloor.f32 %v178_v33 }
  0x10   : > { %v117_v0 = vld [vmem:[%s111_s11 + $0xa] sm:$0xff]  ;;  %v118_v1 = vld [vmem:[%s111_s11 + $0x12] sm:$0xff]  ;;  %v119_v2 = vld [vmem:[%s111_s11 + $0x1a] sm:$0xf]  ;;  %s116_s15 = scalar_lea.vmem %s420_s1, %s327_s12 }
  0x11   : > { %v121_v3 = vsel %vm120_vm0, %v117_v0, -inf  ;;  %v122_v4 = vsel %vm120_vm0, %v118_v1, -inf  ;;  %v124_v5 = vsel %vm123_vm1, %v119_v2, -inf  ;;  %v160_v12 = vld [vmem:[%s111_s11] sm:$0xff]  ;;  %v161_v25 = vld [vmem:[%s111_s11 + $0x8] sm:$0x3] }
  0x12   : > { %v125_v6 = vmax.f32 %v121_v3, %v122_v4  ;;  %v322_v14 = vmul.f32 -1.442695, %v160_v12  ;;  %v323_v28 = vmul.f32 -1.442695, %v161_v25  ;;  %v180_v42 = vmul.f32 7.0, %v179_v39 }
  0x14   : > { %v126_v7 = vmax.f32 %v125_v6, %v124_v5  ;;  %336 = vpow2.f32 %v322_v14  ;;  %v181_v46 = vsub.f32 %v176_v24, %v180_v42 }
  0x16   : > { %v127_v8 = vrot.slane %v126_v7, 4 }
  0x18   : > { %v128_v9 = vmax.f32 %v126_v7, %v127_v8 }
  0x1a   : > { %v129_v10 = vrot.slane %v128_v9, 2 }
  0x1c   : > { %v130_v11 = vmax.f32 %v128_v9, %v129_v10 }
  0x1e   : > { %v131_v13 = vrot.slane %v130_v11, 1  ;;  %v337_v26 = vpop.eup %336 }
  0x1f   : > { %v168_v30 = vadd.f32 1.0, %v337_v26 }
  0x20   : > { %v132_v15 = vmax.f32 %v130_v11, %v131_v13 }
  0x22   : > { %v133_v17 = vsub.f32 %v117_v0, %v132_v15  ;;  %v134_v18 = vsub.f32 %v118_v1, %v132_v15  ;;  %v135_v19 = vsub.f32 %v119_v2, %v132_v15 }
  0x24   : > { %v136_v20 = vmul.f32 1.442695, %v133_v17  ;;  %v138_v21 = vmul.f32 1.442695, %v134_v18  ;;  %v140_v22 = vmul.f32 1.442695, %v135_v19 }
  0x26   : > { %338 = vpow2.f32 %v136_v20 }
  0x27   : > { %340 = vpow2.f32 %v138_v21 }
  0x28   : > { %342 = vpow2.f32 %v140_v22 }
  0x29   : > { %344 = vpow2.f32 %v323_v28 }
  0x2a   : > { %346 = vrcp.f32 %v168_v30 }
  0x30   : > { %v339_v29 = vpop.eup %338 }
  0x31   : > { %v341_v31 = vpop.eup %340  ;;  %v142_v32 = vsel %vm120_vm0, %v339_v29, 0.0 }
  0x32   : > { %v343_v34 = vpop.eup %342  ;;  %v143_v35 = vsel %vm120_vm0, %v341_v31, 0.0 }
  0x33   : > { %v144_v36 = vadd.f32 %v143_v35, %v142_v32  ;;  %v145_v37 = vsel %vm123_vm1, %v343_v34, 0.0  ;;  %v345_v44 = vpop.eup %344 }
  0x34   : > { %v347_v47 = vpop.eup %346  ;;  %v169_v49 = vadd.f32 1.0, %v345_v44 }
  0x35   : > { %v146_v38 = vadd.f32 %v145_v37, %v144_v36  ;;  %v182_v51 = vadd.f32 %v347_v47, %v181_v46  ;;  %v186_v52 = vmul.f32 224.0, %v347_v47  ;;  %v184_v53 = vadd.f32 %v347_v47, %v179_v39 }
  0x37   : > { %v147_v40 = vrot.slane %v146_v38, 4  ;;  %v183_v54 = vmul.f32 64.0, %v182_v51  ;;  %v188_v55 = vrot.slane %v186_v52, 2  ;;  %v185_v56 = vmul.f32 64.0, %v184_v53 }
  0x39   : > { %v148_v41 = vadd.f32 %v147_v40, %v146_v38  ;;  %v192_v57 = vadd.f32 %v188_v55, %v183_v54  ;;  %v190_v58 = vsub.f32 %v183_v54, %v188_v55  ;;  %v191_v59 = vsub.f32 %v185_v56, %v188_v55 }
  0x3a   : > { %v193_v60 = vadd.f32 %v188_v55, %v185_v56 }
  0x3b   : > { %v149_v43 = vrot.slane %v148_v41, 2  ;;  %v195_v61 = vrot.slane %v192_v57, 6  ;;  %v237_v62 = vsel %vm236_vm2, %v190_v58, %v191_v59  ;;  %v217_v11 = vrot.slane %v190_v58, 3 }
  0x3c   : > { %v198_v2 = vrot.slane %v193_v60, 6  ;;  %v220_v13 = vrot.slane %v191_v59, 3  ;;  %v222_v14 = vrot.slane %v192_v57, 1  ;;  %v224_v19 = vrot.slane %v193_v60, 1 }
  0x3d   : > { %v150_v45 = vadd.f32 %v149_v43, %v148_v41  ;;  %v239_v3 = vsel %vm238_vm3, %v237_v62, %v195_v61 }
  0x3e   : > { %v241_v7 = vsel %vm240_vm4, %v239_v3, %v198_v2 }
  0x3f   : > { %v151_v48 = vrot.slane %v150_v45, 1 }
  0x41   : > { %v152_v50 = vadd.f32 %v151_v48, %v150_v45 }
  0x43   : > { %348 = vrcp.f32 %v152_v50 }
  0x44   : > { %350 = vrcp.f32 %v169_v49 }
  0x4d   : > { %v349_v63 = vpop.eup %348 }
  0x4e   : > { %v351_v0 = vpop.eup %350  ;;  %v154_v1 = vmul.f32 %v349_v63, %v152_v50 }
  0x4f   : > { %v201_v5 = vrot.slane %v351_v0, 4 }
  0x50   : > { %v155_v4 = vsub.f32 2.0, %v154_v1 }
  0x51   : > { %v243_v12 = vsel %vm242_vm5, %v241_v7, %v201_v5 }
  0x52   : > { %v156_v6 = vmul.f32 %v349_v63, %v155_v4 }
  0x54   : > { %v157_v8 = vmul.f32 %v339_v29, %v156_v6  ;;  %v158_v9 = vmul.f32 %v341_v31, %v156_v6  ;;  %v159_v10 = vmul.f32 %v343_v34, %v156_v6 }
  0x56   : > { %v207_v15 = vrot.slane %v157_v8, 3  ;;  %v208_v16 = vrot.slane %v158_v9, 3  ;;  %v210_v17 = vrot.slane %v159_v10, 3  ;;  %v227_v18 = vrot.slane %v157_v8, 2 }
  0x57   : > { %v228_v20 = vrot.slane %v158_v9, 2  ;;  %v230_v21 = vrot.slane %v159_v10, 2 }
  0x58   : > { %v244_v22 = vsel %vm206_vm6, %v243_v12, %v207_v15  ;;  %v209_v23 = vsel %vm206_vm6, %v207_v15, %v208_v16  ;;  %v211_v24 = vsel %vm206_vm6, %v208_v16, %v210_v17  ;;  %v245_v25 = vsel %vm236_vm2, %v210_v17, %v217_v11 }
  0x59   : > { %251 = vst.msk [vmem:[%s116_s15] sm:$0xff] %vm120_vm0, %v244_v22  ;;  %252 = vst.msk [vmem:[%s116_s15 + $0x8] sm:$0xff] %vm120_vm0, %v209_v23  ;;  %v246_v26 = vsel %vm238_vm3, %v245_v25, %v220_v13  ;;  %v229_v27 = vsel %vm226_vm7, %v227_v18, %v228_v20  ;;  %v231_v28 = vsel %vm226_vm7, %v228_v20, %v230_v21 }
  0x5a   : > { %253 = vst.msk [vmem:[%s116_s15 + $0x10] sm:$0xff] %vm120_vm0, %v211_v24  ;;  %v247_v29 = vsel %vm240_vm4, %v246_v26, %v222_v14  ;;  %255 = vst.msk [vmem:[%s116_s15 + $0x20] sm:$0xff] %vm120_vm0, %v229_v27 }
  0x5b   : > { %258 = vst.msk [vmem:[%s116_s15 + $0x30] sm:$0x3] %vm257_vm8, %v230_v21  ;;  %v248_v30 = vsel %vm242_vm5, %v247_v29, %v224_v19 }
  0x5c   : > { %256 = vst.msk [vmem:[%s116_s15 + $0x28] sm:$0xff] %vm120_vm0, %v231_v28  ;;  %v249_v31 = vsel %vm206_vm6, %v248_v30, %v201_v5 }
  0x5d   : > { %v250_v32 = vsel %vm226_vm7, %v249_v31, %v227_v18 }
  0x5e   : > { %254 = vst.msk [vmem:[%s116_s15 + $0x18] sm:$0xff] %vm120_vm0, %v250_v32 }
  0x5f PF: > { %s11_s6 = sadd.s32 1, %s358_s6  }
  0x60   : > { %p8_p4 = scmp.ge.s32.totalorder %s11_s6, 4  }
  0x62   :  { %10 = sbr.rel (!%p8_p4) target bundleno = 1 (0x1), region = 54 }

</bundles_post_ra>
